<compile_context>
chip_gen: v7x
topology: tpu7x:2x2x1
jax: 0.10.0
libtpu: 0.0.40
codegen_flags: <defaults>
</compile_context>

<pallas_src>
import functools

import jax
import jax.numpy as jnp
from jax.experimental import pallas as pl
from jax.experimental.pallas import tpu as pltpu

EPS = 1e-5

# --------------------------------------------------------------------------
# VMEM budget / tiling helpers
# --------------------------------------------------------------------------
_VMEM_CAP = None


def _vmem_capacity():
    global _VMEM_CAP
    if _VMEM_CAP is None:
        try:
            _VMEM_CAP = int(pltpu.get_tpu_info().vmem_capacity_bytes)
        except Exception:
            _VMEM_CAP = 64 * 1024 * 1024      # conservative (v7x-sized) fallback
    return _VMEM_CAP


def _vmem_limit(tile_bytes):
    # generation-aware cap: ~60% of physical VMEM (≈38 MiB on v7x, ≈76 MiB on v5e/v6e)
    cap = max(int(_vmem_capacity() * 0.6), 16 << 20)
    return int(min(max(int(tile_bytes) + (4 << 20), 16 << 20), cap))


def _round_up(x, m):
    return ((x + m - 1) // m) * m


def _choose_tm(m):
    """Row tile size: 512 for large problems; otherwise aim for >=2 tiles (v7x 2 TCs)."""
    if m >= 1024:
        return 512
    if m <= 8:
        return 8
    return max(8, _round_up(-(-m // 2), 8))


def _apply_act(x, act):
    if act == "relu":
        return jnp.maximum(x, 0.0)
    if act == "sigmoid":
        return jax.nn.sigmoid(x)
    return x


# --------------------------------------------------------------------------
# Pallas kernels
# --------------------------------------------------------------------------
@functools.lru_cache(maxsize=None)
def _make_gemm_kernel(act, has_res):
    if has_res:
        def kern(x_ref, w_ref, b_ref, r_ref, o_ref):
            acc = jnp.dot(x_ref[...], w_ref[...],
                          preferred_element_type=jnp.float32)
            acc = acc + b_ref[...] + r_ref[...].astype(jnp.float32)
            o_ref[...] = _apply_act(acc, act)
    else:
        def kern(x_ref, w_ref, b_ref, o_ref):
            acc = jnp.dot(x_ref[...], w_ref[...],
                          preferred_element_type=jnp.float32)
            acc = acc + b_ref[...]
            o_ref[...] = _apply_act(acc, act)
    return kern


@functools.lru_cache(maxsize=None)
def _make_tap_conv_kernel(n_in, tap_offsets, cin, tm, act, has_res):
    """Direct 'same' conv: per-tap row-shifted slices of a VMEM slab -> MXU dots."""
    tap_offsets = tuple(tap_offsets)

    def kern(*refs):
        x_refs = refs[:n_in]
        w_ref = refs[n_in]
        b_ref = refs[n_in + 1]
        r_ref = refs[n_in + 2] if has_res else None
        o_ref = refs[-1]
        if n_in > 1:
            cat = jnp.concatenate([r[...] for r in x_refs], axis=0)
        else:
            cat = x_refs[0][...]
        acc = None
        for t, off in enumerate(tap_offsets):
            slab = cat[off:off + tm, :]
            part = jnp.dot(slab, w_ref[t * cin:(t + 1) * cin, :],
                           preferred_element_type=jnp.float32)
            acc = part if acc is None else acc + part
        acc = acc + b_ref[...]
        if has_res:
            acc = acc + r_ref[...].astype(jnp.float32)
        o_ref[...] = _apply_act(acc, act)

    return kern


@functools.lru_cache(maxsize=None)
def _make_sum_affine_kernel(n_in, act):
    def kern(*refs):
        xs = refs[:n_in]
        scale_ref = refs[n_in]
        shift_ref = refs[n_in + 1]
        o_ref = refs[-1]
        acc = xs[0][...]
        for r in xs[1:]:
            acc = acc + r[...]
        acc = acc * scale_ref[...] + shift_ref[...]
        o_ref[...] = _apply_act(acc, act)
    return kern


@functools.lru_cache(maxsize=None)
def _make_nary_reduce_kernel(n, op):
    def kern(*refs):
        o_ref = refs[-1]
        acc = refs[0][...]
        for i in range(1, n):
            v = refs[i][...]
            acc = jnp.maximum(acc, v) if op == "max" else acc + v
        if op == "avg":
            acc = acc * (1.0 / n)
        o_ref[...] = acc
    return kern


def _spade_mod_kernel(x_ref, gb_ref, sc_ref, sh_ref, o_ref):
    # param-free BN of x + SPADE modulation; gamma/beta arrive concatenated (lane dense).
    c = x_ref.shape[1]
    gb = gb_ref[...]
    gamma = gb[:, :c]
    beta = gb[:, c:]
    o_ref[...] = (x_ref[...] * sc_ref[...] + sh_ref[...]) * gamma + beta


def _sigmoid_kernel(x_ref, o_ref):
    o_ref[...] = jax.nn.sigmoid(x_ref[...])


# --------------------------------------------------------------------------
# Pallas call wrappers
# --------------------------------------------------------------------------
def _row_tiled(kernel, tiled, bcast, out_cols, out_dtype=jnp.float32):
    """Generic row-tiled elementwise pallas_call (parallel grid, pipelined)."""
    M = tiled[0].shape[0]
    tm = _choose_tm(M)
    grid_m = pl.cdiv(M, tm)
    in_specs = ([pl.BlockSpec((tm, a.shape[1]), lambda i: (i, 0)) for a in tiled]
                + [pl.BlockSpec((1, a.shape[1]), lambda i: (0, 0)) for a in bcast])
    tile_bytes = (sum(2 * tm * a.shape[1] * a.dtype.itemsize for a in tiled)
                  + sum(a.shape[1] * a.dtype.itemsize for a in bcast)
                  + 2 * tm * out_cols * jnp.dtype(out_dtype).itemsize)
    return pl.pallas_call(
        kernel,
        grid=(grid_m,),
        in_specs=in_specs,
        out_specs=pl.BlockSpec((tm, out_cols), lambda i: (i, 0)),
        out_shape=jax.ShapeDtypeStruct((M, out_cols), out_dtype),
        compiler_params=pltpu.CompilerParams(
            dimension_semantics=("parallel",),
            vmem_limit_bytes=_vmem_limit(tile_bytes)),
    )(*tiled, *bcast)


def _pallas_gemm(xmat, wmat, bias, residual=None, act="none"):
    """out = act(xmat @ wmat + bias [+ residual]); bf16 inputs, f32 accumulation."""
    M, K = xmat.shape
    Nc = wmat.shape[1]
    has_res = residual is not None
    kern = _make_gemm_kernel(act, has_res)
    tm = _choose_tm(M)
    grid_m = pl.cdiv(M, tm)

    in_specs = [pl.BlockSpec((tm, K), lambda i: (i, 0)),
                pl.BlockSpec((K, Nc), lambda i: (0, 0)),
                pl.BlockSpec((1, Nc), lambda i: (0, 0))]
    args = [xmat, wmat, bias]
    if has_res:
        in_specs.append(pl.BlockSpec((tm, Nc), lambda i: (i, 0)))
        args.append(residual)

    tile_bytes = (2 * tm * K * xmat.dtype.itemsize
                  + 2 * K * Nc * wmat.dtype.itemsize
                  + 2 * tm * Nc * 4 + tm * Nc * 4
                  + (2 * tm * Nc * residual.dtype.itemsize if has_res else 0))
    return pl.pallas_call(
        kern,
        grid=(grid_m,),
        in_specs=in_specs,
        out_specs=pl.BlockSpec((tm, Nc), lambda i: (i, 0)),
        out_shape=jax.ShapeDtypeStruct((M, Nc), jnp.float32),
        compiler_params=pltpu.CompilerParams(
            dimension_semantics=("parallel",),
            vmem_limit_bytes=_vmem_limit(tile_bytes)),
    )(*args)


def _conv_same_tap(x, w, b, act="none", residual=None):
    """stride-1 'same' KxK conv with NO materialized im2col in HBM.

    The padded activation is flattened to (rows, C) with G = p*Wp + p guard rows;
    output row i (on the padded grid) needs rows [i, i + 2G] of that slab, so each
    grid step reads its own row tile plus n_extra look-ahead tiles of the SAME
    array, and the taps become static in-VMEM row-shifted slices.
    """
    N, H, W, C = x.shape
    kh, kw, _, cout = w.shape
    p = kh // 2
    Hp, Wp = H + 2 * p, W + 2 * p
    G = p * Wp + p
    M = N * Hp * Wp
    tm = _choose_tm(M)
    grid_m = pl.cdiv(M, tm)
    n_extra = pl.cdiv(2 * G, tm)
    n_in = n_extra + 1
    R = (grid_m + n_extra) * tm                      # total rows of the guarded slab

    xflat = jnp.pad(x.astype(jnp.bfloat16),
                    ((0, 0), (p, p), (p, p), (0, 0))).reshape(M, C)
    xg = jnp.pad(xflat, ((G, R - M - G), (0, 0)))    # guard rows keep all reads in-bounds

    wmat = w.reshape(kh * kw * C, cout).astype(jnp.bfloat16)
    bvec = b.reshape(1, cout).astype(jnp.float32)
    tap_offsets = tuple(dy * Wp + dx for dy in range(kh) for dx in range(kw))

    args = [xg] * n_in + [wmat, bvec]
    in_specs = [pl.BlockSpec((tm, C), (lambda i, j=j: (i + j, 0)))
                for j in range(n_in)]
    in_specs.append(pl.BlockSpec((kh * kw * C, cout), lambda i: (0, 0)))
    in_specs.append(pl.BlockSpec((1, cout), lambda i: (0, 0)))

    has_res = residual is not None
    if has_res:
        rflat = jnp.pad(residual.astype(jnp.bfloat16),
                        ((0, 0), (p, p), (p, p), (0, 0))).reshape(M, cout)
        args.append(rflat)
        in_specs.append(pl.BlockSpec((tm, cout), lambda i: (i, 0)))

    tile_bytes = (3 * n_in * tm * C * 2                 # double-buffered inputs + cat
                  + 2 * kh * kw * C * cout * 2          # weights
                  + tm * kh * kw * C * 2                # live tap slabs (upper bound)
                  + 3 * tm * cout * 4                   # output + f32 acc
                  + (2 * tm * cout * 2 if has_res else 0))

    kern = _make_tap_conv_kernel(n_in, tap_offsets, C, tm, act, has_res)
    out = pl.pallas_call(
        kern,
        grid=(grid_m,),
        in_specs=in_specs,
        out_specs=pl.BlockSpec((tm, cout), lambda i: (i, 0)),
        out_shape=jax.ShapeDtypeStruct((M, cout), jnp.float32),
        compiler_params=pltpu.CompilerParams(
            dimension_semantics=("parallel",),
            vmem_limit_bytes=_vmem_limit(tile_bytes)),
    )(*args)
    out = out.reshape(N, Hp, Wp, cout)
    return out[:, p:p + H, p:p + W, :]                  # drop padded-grid border rows


# --------------------------------------------------------------------------
# JAX glue: conv / pooling / resize wrappers around the Pallas kernels
# --------------------------------------------------------------------------
def _im2col(x, kh, kw, stride, padding, dilation=1, pad_value=0.0):
    # Only used for the few strided convs (stem 7x7 s2, stride-2 3x3 bottlenecks).
    N, H, W, C = x.shape
    if padding:
        x = jnp.pad(x, ((0, 0), (padding, padding), (padding, padding), (0, 0)),
                    constant_values=pad_value)
    Hp, Wp = H + 2 * padding, W + 2 * padding
    Ho = (Hp - dilation * (kh - 1) - 1) // stride + 1
    Wo = (Wp - dilation * (kw - 1) - 1) // stride + 1
    cols = []
    for dy in range(kh):
        for dx in range(kw):
            ys, xs = dy * dilation, dx * dilation
            patch = jax.lax.slice(
                x,
                (0, ys, xs, 0),
                (N, ys + (Ho - 1) * stride + 1, xs + (Wo - 1) * stride + 1, C),
                (1, stride, stride, 1))
            cols.append(patch)
    patches = jnp.concatenate(cols, axis=-1)            # (N, Ho, Wo, kh*kw*C)
    return patches, (N, Ho, Wo)


def fold_bn(w, b, bn, eps=EPS):
    s = bn["gamma"] / jnp.sqrt(bn["var"] + eps)
    w2 = w * s                                           # broadcast over cout (last dim)
    b2 = (b - bn["mean"]) * s + bn["beta"]
    return w2, b2


def conv2d(x, p, *, stride=1, padding=0, dilation=1, bn=None, act="none",
           residual=None):
    w, b = p["w"], p["b"]
    if bn is not None:
        w, b = fold_bn(w, b, bn)
    kh, kw, cin, cout = w.shape

    # 1x1 convs: plain GEMM (strided subsample for stride>1), no im2col at all.
    if kh == 1 and kw == 1 and padding == 0 and dilation == 1:
        if stride > 1:
            x = x[:, ::stride, ::stride, :]
        N, H, W, _ = x.shape
        xf = x.astype(jnp.bfloat16).reshape(N * H * W, cin)
        res = (residual.reshape(N * H * W, cout).astype(jnp.bfloat16)
               if residual is not None else None)
        out = _pallas_gemm(xf, w.reshape(cin, cout).astype(jnp.bfloat16),
                           b.reshape(1, cout).astype(jnp.float32),
                           residual=res, act=act)
        return out.reshape(N, H, W, cout)

    # stride-1 'same' KxK convs: direct tap-accumulation path (no HBM im2col).
    if (stride == 1 and dilation == 1 and kh == kw and kh % 2 == 1
            and padding == kh // 2):
        return _conv_same_tap(x, w, b, act=act, residual=residual)

    # Fallback (stem 7x7 s2, stride-2 3x3): materialized im2col + tiled GEMM.
    patches, (N, Ho, Wo) = _im2col(x.astype(jnp.bfloat16), kh, kw,
                                   stride, padding, dilation)
    patches = patches.reshape(N * Ho * Wo, kh * kw * cin)
    wmat = w.reshape(kh * kw * cin, cout).astype(jnp.bfloat16)
    bvec = b.reshape(1, cout).astype(jnp.float32)
    res = (residual.reshape(N * Ho * Wo, cout).astype(jnp.bfloat16)
           if residual is not None else None)
    out = _pallas_gemm(patches, wmat, bvec, residual=res, act=act)
    return out.reshape(N, Ho, Wo, cout)


def pool2d(x, k, stride, padding, op, pad_value=0.0):
    """Max/avg pool via strided slices + a row-tiled n-ary Pallas reduce kernel."""
    # TODO(synk): 'avg' with padding>0 would use count_include_pad semantics;
    #             only called with padding=0 in this network.
    N, H, W, C = x.shape
    if padding:
        x = jnp.pad(x, ((0, 0), (padding, padding), (padding, padding), (0, 0)),
                    constant_values=pad_value)
    Hp, Wp = H + 2 * padding, W + 2 * padding
    Ho = (Hp - k) // stride + 1
    Wo = (Wp - k) // stride + 1
    slices = []
    for dy in range(k):
        for dx in range(k):
            s = jax.lax.slice(
                x,
                (0, dy, dx, 0),
                (N, dy + (Ho - 1) * stride + 1, dx + (Wo - 1) * stride + 1, C),
                (1, stride, stride, 1))
            slices.append(s)
    total = N * Ho * Wo * C
    if total % 128 == 0:                                  # lane-dense reduce
        flats = [s.reshape(total // 128, 128) for s in slices]
        cols = 128
    else:
        flats = [s.reshape(N * Ho * Wo, C) for s in slices]
        cols = C
    out = _row_tiled(_make_nary_reduce_kernel(k * k, op), flats, [], cols)
    return out.reshape(N, Ho, Wo, C)


def avgpool2(x):
    return pool2d(x, 2, 2, 0, "avg", 0.0)


def maxpool3s2(x):
    return pool2d(x, 3, 2, 1, "max", -1e30)


def upsample2_nearest(x):
    x = jnp.repeat(x, 2, axis=1)
    return jnp.repeat(x, 2, axis=2)


def resize_bilinear(x, h, w):
    # matches F.interpolate(mode='bilinear', align_corners=False) for upsampling
    N, _, _, C = x.shape
    return jax.image.resize(x, (N, h, w, C), method="bilinear")


def bn_act(xs, bn, act="relu"):
    """act((sum(xs)) * scale + shift) — sum/affine/activation in one row-tiled kernel."""
    N, H, W, C = xs[0].shape
    scale = bn["gamma"] / jnp.sqrt(bn["var"] + EPS)
    shift = bn["beta"] - bn["mean"] * scale
    M = N * H * W
    rep = 1
    if C < 128 and 128 % C == 0 and M % (128 // C) == 0:
        rep = 128 // C                                    # lane-dense (C=64 -> 128)
    Mr, Cr = M // rep, C * rep
    flats = [a.reshape(Mr, Cr) for a in xs]
    scale_r = jnp.tile(scale, rep).reshape(1, Cr).astype(jnp.float32)
    shift_r = jnp.tile(shift, rep).reshape(1, Cr).astype(jnp.float32)
    out = _row_tiled(_make_sum_affine_kernel(len(xs), act), flats,
                     [scale_r, shift_r], Cr)
    return out.reshape(N, H, W, C)


def sigmoid_pallas(x):
    shp = x.shape
    total = int(x.size)
    if total % 128 == 0:
        flat = x.reshape(total // 128, 128)               # lane-dense stores
    else:
        flat = x.reshape(-1, shp[-1])
    out = _row_tiled(_sigmoid_kernel, [flat], [], flat.shape[1])
    return out.reshape(shp)


# --------------------------------------------------------------------------
# Deterministic parameter initialization
# --------------------------------------------------------------------------
class ParamRNG:
    def __init__(self, seed):
        self._key = jax.random.PRNGKey(seed)
        self._n = 0

    def next(self):
        self._n += 1
        return jax.random.fold_in(self._key, self._n)


def init_conv(rng, kh, kw, cin, cout):
    fan_in = kh * kw * cin
    w = jax.random.normal(rng.next(), (kh, kw, cin, cout), jnp.float32) \
        * jnp.sqrt(2.0 / fan_in)
    b = 0.01 * jax.random.normal(rng.next(), (cout,), jnp.float32)
    return {"w": w, "b": b}


def init_bn(rng, c, affine=True):
    if affine:
        gamma = 1.0 + 0.1 * jax.random.normal(rng.next(), (c,), jnp.float32)
        beta = 0.1 * jax.random.normal(rng.next(), (c,), jnp.float32)
    else:
        gamma = jnp.ones((c,), jnp.float32)
        beta = jnp.zeros((c,), jnp.float32)
    mean = 0.1 * jax.random.normal(rng.next(), (c,), jnp.float32)
    var = 1.0 + 0.1 * jax.random.uniform(rng.next(), (c,), jnp.float32)
    return {"gamma": gamma, "beta": beta, "mean": mean, "var": var}


def init_bottleneck(rng, cin, width, cout, stride):
    p = {"stride": stride,
         "conv1": init_conv(rng, 1, 1, cin, width), "bn1": init_bn(rng, width),
         "conv2": init_conv(rng, 3, 3, width, width), "bn2": init_bn(rng, width),
         "conv3": init_conv(rng, 1, 1, width, cout), "bn3": init_bn(rng, cout)}
    if stride != 1 or cin != cout:
        p["down"] = init_conv(rng, 1, 1, cin, cout)
        p["down_bn"] = init_bn(rng, cout)
    return p


def init_resnet50(rng):
    p = {"conv1": init_conv(rng, 7, 7, 3, 64), "bn1": init_bn(rng, 64)}

    def make_layer(cin, width, blocks, stride):
        cout = width * 4
        layer = [init_bottleneck(rng, cin, width, cout, stride)]
        for _ in range(blocks - 1):
            layer.append(init_bottleneck(rng, cout, width, cout, 1))
        return layer

    p["layer1"] = make_layer(64, 64, 3, 1)
    p["layer2"] = make_layer(256, 128, 4, 2)
    p["layer3"] = make_layer(512, 256, 6, 2)
    p["layer4"] = make_layer(1024, 512, 3, 2)
    return p


def init_squeeze(rng, cin, cout):
    return {"conv": init_conv(rng, 1, 1, cin, cout), "bn": init_bn(rng, cout)}


def init_spade(rng, norm_nc, label_nc):
    return {"pf_bn": init_bn(rng, norm_nc, affine=False),
            "shared": init_conv(rng, 3, 3, label_nc, norm_nc),
            "gamma": init_conv(rng, 3, 3, norm_nc, norm_nc),
            "beta": init_conv(rng, 3, 3, norm_nc, norm_nc)}


def init_conv2n(rng, in_hc, in_lc, out_c, main):
    mid = min(in_hc, in_lc)
    p = {"main": main,
         "h2h_0": init_conv(rng, 3, 3, in_hc, mid),
         "l2l_0": init_conv(rng, 3, 3, in_lc, mid),
         "bnh_0": init_bn(rng, mid), "bnl_0": init_bn(rng, mid),
         "h2h_1": init_conv(rng, 3, 3, mid, mid),
         "h2l_1": init_conv(rng, 3, 3, mid, mid),
         "l2h_1": init_conv(rng, 3, 3, mid, mid),
         "l2l_1": init_conv(rng, 3, 3, mid, mid),
         "bnl_1": init_bn(rng, mid), "bnh_1": init_bn(rng, mid)}
    if main == 0:
        p.update({"h2h_2": init_conv(rng, 3, 3, mid, mid),
                  "l2h_2": init_conv(rng, 3, 3, mid, mid),
                  "bnh_2": init_bn(rng, mid),
                  "h2h_3": init_conv(rng, 3, 3, mid, out_c),
                  "bnh_3": init_bn(rng, out_c),
                  "identity": init_conv(rng, 1, 1, in_hc, out_c)})
    else:
        p.update({"h2l_2": init_conv(rng, 3, 3, mid, mid),
                  "l2l_2": init_conv(rng, 3, 3, mid, mid),
                  "bnl_2": init_bn(rng, mid),
                  "l2l_3": init_conv(rng, 3, 3, mid, out_c),
                  "bnl_3": init_bn(rng, out_c),
                  "identity": init_conv(rng, 1, 1, in_lc, out_c)})
    return p


def init_conv3n(rng, in_hc, in_mc, in_lc, out_c):
    mid = min(in_hc, in_mc, in_lc)
    p = {"h2h_0": init_conv(rng, 3, 3, in_hc, mid),
         "m2m_0": init_conv(rng, 3, 3, in_mc, mid),
         "l2l_0": init_conv(rng, 3, 3, in_lc, mid),
         "bnh_0": init_bn(rng, mid), "bnm_0": init_bn(rng, mid),
         "bnl_0": init_bn(rng, mid)}
    for name in ("h2h_1", "h2m_1", "m2h_1", "m2m_1", "m2l_1", "l2m_1", "l2l_1",
                 "h2m_2", "l2m_2", "m2m_2"):
        p[name] = init_conv(rng, 3, 3, mid, mid)
    p["bnh_1"] = init_bn(rng, mid)
    p["bnm_1"] = init_bn(rng, mid)
    p["bnl_1"] = init_bn(rng, mid)
    p["bnm_2"] = init_bn(rng, mid)
    p["m2m_3"] = init_conv(rng, 3, 3, mid, out_c)
    p["bnm_3"] = init_bn(rng, out_c)
    p["identity"] = init_conv(rng, 1, 1, in_mc, out_c)
    return p


def init_basnet(rng, basic_channels=64):
    bc = basic_channels
    P = {"backbone": init_resnet50(rng)}
    P["squeeze5"] = init_squeeze(rng, 2048, bc)
    P["squeeze4"] = init_squeeze(rng, 1024, bc)
    P["squeeze3"] = init_squeeze(rng, 512, bc)
    P["squeeze2"] = init_squeeze(rng, 256, bc)
    P["squeeze1"] = init_squeeze(rng, 64, bc)
    for i in range(1, 6):
        P[f"spade{i}"] = init_spade(rng, bc, bc)
    for i in range(1, 6):
        P[f"conv_out{i}"] = init_conv(rng, 3, 3, bc, 1)
    P["conv_final"] = {"conv1": init_conv(rng, 3, 3, bc, bc),
                       "bn": init_bn(rng, bc),
                       "conv2": init_conv(rng, 3, 3, bc, 1)}
    P["conv_2nV1_1"] = init_conv2n(rng, bc * 2, bc, bc, main=0)
    P["conv_3nV1_1"] = init_conv3n(rng, bc, bc * 2, bc, bc)
    P["conv_3nV1_2"] = init_conv3n(rng, bc, bc * 2, bc, bc)
    P["conv_3nV1_3"] = init_conv3n(rng, bc, bc * 2, bc, bc)  # defined but unused (as in reference)
    P["conv_2nV1_2"] = init_conv2n(rng, bc, bc, bc, main=1)
    return P


# --------------------------------------------------------------------------
# Module forward functions
# --------------------------------------------------------------------------
def bottleneck_fwd(p, x):
    identity = x
    out = conv2d(x, p["conv1"], padding=0, bn=p["bn1"], act="relu")
    out = conv2d(out, p["conv2"], stride=p["stride"], padding=1,
                 bn=p["bn2"], act="relu")
    if "down" in p:
        identity = conv2d(x, p["down"], stride=p["stride"], padding=0,
                          bn=p["down_bn"], act="none")
    # bn3 folded into conv3, residual add + relu fused into the GEMM epilogue
    return conv2d(out, p["conv3"], padding=0, bn=p["bn3"], act="relu",
                  residual=identity)


def resnet_features(p, x):
    d2 = conv2d(x, p["conv1"], stride=2, padding=3, bn=p["bn1"], act="relu")
    h = maxpool3s2(d2)
    for bp in p["layer1"]:
        h = bottleneck_fwd(bp, h)
    d4 = h
    for bp in p["layer2"]:
        h = bottleneck_fwd(bp, h)
    d8 = h
    for bp in p["layer3"]:
        h = bottleneck_fwd(bp, h)
    d16 = h
    for bp in p["layer4"]:
        h = bottleneck_fwd(bp, h)
    d32 = h
    return d2, d4, d8, d16, d32


def squeeze_fwd(p, x):
    return conv2d(x, p["conv"], padding=0, bn=p["bn"], act="relu")


def spade_fwd(p, x, segmap):
    """SPADE: param-free BN(x) * gamma(actv) + beta(actv)."""
    actv = conv2d(segmap, p["shared"], padding=1, act="relu")
    N, H, W, C = x.shape
    # gamma & beta from ONE lane-dense GEMM over the shared patches (Nc = 2C = 128)
    w_cat = jnp.concatenate([p["gamma"]["w"], p["beta"]["w"]], axis=-1)   # (3,3,C,2C)
    b_cat = jnp.concatenate([p["gamma"]["b"], p["beta"]["b"]], axis=-1)   # (2C,)
    gb = _conv_same_tap(actv, w_cat, b_cat, act="none")                   # (N,H,W,2C)

    bn = p["pf_bn"]
    scale = bn["gamma"] / jnp.sqrt(bn["var"] + EPS)
    shift = bn["beta"] - bn["mean"] * scale
    M = N * H * W
    out = _row_tiled(_spade_mod_kernel,
                     [x.reshape(M, C), gb.reshape(M, 2 * C)],
                     [scale.reshape(1, C).astype(jnp.float32),
                      shift.reshape(1, C).astype(jnp.float32)],
                     C)
    return out.reshape(N, H, W, C)


def conv2n_fwd(p, in_h, in_l):
    h = conv2d(in_h, p["h2h_0"], padding=1, bn=p["bnh_0"], act="relu")
    l = conv2d(in_l, p["l2l_0"], padding=1, bn=p["bnl_0"], act="relu")
    h2h = conv2d(h, p["h2h_1"], padding=1)
    h2l = conv2d(avgpool2(h), p["h2l_1"], padding=1)
    l2l = conv2d(l, p["l2l_1"], padding=1)
    l2h = conv2d(upsample2_nearest(l), p["l2h_1"], padding=1)
    h = bn_act([h2h, l2h], p["bnh_1"], "relu")
    l = bn_act([l2l, h2l], p["bnl_1"], "relu")
    if p["main"] == 0:
        h2h = conv2d(h, p["h2h_2"], padding=1)
        l2h = conv2d(upsample2_nearest(l), p["l2h_2"], padding=1)
        h_fuse = bn_act([h2h, l2h], p["bnh_2"], "relu")
        ident = conv2d(in_h, p["identity"], padding=0)
        out = conv2d(h_fuse, p["h2h_3"], padding=1, bn=p["bnh_3"], act="relu",
                     residual=ident)
    else:
        h2l = conv2d(avgpool2(h), p["h2l_2"], padding=1)
        l2l = conv2d(l, p["l2l_2"], padding=1)
        l_fuse = bn_act([h2l, l2l], p["bnl_2"], "relu")
        ident = conv2d(in_l, p["identity"], padding=0)
        out = conv2d(l_fuse, p["l2l_3"], padding=1, bn=p["bnl_3"], act="relu",
                     residual=ident)
    return out


def conv3n_fwd(p, in_h, in_m, in_l):
    h = conv2d(in_h, p["h2h_0"], padding=1, bn=p["bnh_0"], act="relu")
    m = conv2d(in_m, p["m2m_0"], padding=1, bn=p["bnm_0"], act="relu")
    l = conv2d(in_l, p["l2l_0"], padding=1, bn=p["bnl_0"], act="relu")
    h2h = conv2d(h, p["h2h_1"], padding=1)
    m2h = conv2d(upsample2_nearest(m), p["m2h_1"], padding=1)
    h2m = conv2d(avgpool2(h), p["h2m_1"], padding=1)
    m2m = conv2d(m, p["m2m_1"], padding=1)
    l2m = conv2d(upsample2_nearest(l), p["l2m_1"], padding=1)
    m2l = conv2d(avgpool2(m), p["m2l_1"], padding=1)
    l2l = conv2d(l, p["l2l_1"], padding=1)
    h = bn_act([h2h, m2h], p["bnh_1"], "relu")
    m = bn_act([h2m, m2m, l2m], p["bnm_1"], "relu")
    l = bn_act([m2l, l2l], p["bnl_1"], "relu")
    h2m = conv2d(avgpool2(h), p["h2m_2"], padding=1)
    m2m = conv2d(m, p["m2m_2"], padding=1)
    l2m = conv2d(upsample2_nearest(l), p["l2m_2"], padding=1)
    m = bn_act([h2m, m2m, l2m], p["bnm_2"], "relu")
    ident = conv2d(in_m, p["identity"], padding=0)
    return conv2d(m, p["m2m_3"], padding=1, bn=p["bnm_3"], act="relu",
                  residual=ident)


def mksp_fwd(_params, x):
    # TODO(synk): MKSP block definition is not provided in the source module;
    #             using an identity pass-through that returns (x, x).
    return x, x


def basnet_forward(P, x, defocus):
    N, H, W, _ = x.shape
    bb = P["backbone"]

    # ---- Batched backbone: image and 3-channel defocus run as one 2N pass.
    def3 = jnp.concatenate([defocus, defocus, defocus], axis=-1)
    xin = jnp.concatenate([x, def3], axis=0)               # (2N, H, W, 3)
    d2, d4, d8, d16, d32 = resnet_features(bb, xin)
    s2 = squeeze_fwd(P["squeeze1"], d2)
    s4 = squeeze_fwd(P["squeeze2"], d4)
    s8 = squeeze_fwd(P["squeeze3"], d8)
    s16 = squeeze_fwd(P["squeeze4"], d16)
    s32 = squeeze_fwd(P["squeeze5"], d32)
    skip_2, defocus1 = s2[:N], s2[N:]
    skip_4, defocus2 = s4[:N], s4[N:]
    skip_8, defocus3 = s8[:N], s8[N:]
    skip_16, defocus4 = s16[:N], s16[N:]
    skip_32, defocus5 = s32[:N], s32[N:]

    skip_32 = spade_fwd(P["spade5"], skip_32, defocus5)
    skip_16 = spade_fwd(P["spade4"], skip_16, defocus4)
    skip_8 = spade_fwd(P["spade3"], skip_8, defocus3)
    skip_4 = spade_fwd(P["spade2"], skip_4, defocus2)
    skip_2 = spade_fwd(P["spade1"], skip_2, defocus1)

    dec_32 = conv2n_fwd(P["conv_2nV1_2"], skip_16, skip_32)
    dec_32, _ = mksp_fwd(None, dec_32)
    dec_32, _ = mksp_fwd(None, dec_32)

    dec_16 = resize_bilinear(dec_32, H // 16, W // 16)
    dec_16 = conv3n_fwd(P["conv_3nV1_1"], skip_8,
                        jnp.concatenate([dec_16, skip_16], axis=-1), skip_32)
    dec_16, _ = mksp_fwd(None, dec_16)
    dec_16, _ = mksp_fwd(None, dec_16)

    dec_8 = resize_bilinear(dec_16, H // 8, W // 8)
    dec_8 = conv3n_fwd(P["conv_3nV1_2"], skip_4,
                       jnp.concatenate([dec_8, skip_8], axis=-1), skip_16)
    dec_8, _ = mksp_fwd(None, dec_8)
    dec_8, _ = mksp_fwd(None, dec_8)

    dec_4 = resize_bilinear(dec_8, H // 4, W // 4)
    dec_4 = conv3n_fwd(P["conv_3nV1_2"], skip_2,
                       jnp.concatenate([dec_4, skip_4], axis=-1), skip_8)
    dec_4, _ = mksp_fwd(None, dec_4)
    dec_4, _ = mksp_fwd(None, dec_4)

    dec_2 = resize_bilinear(dec_4, H // 2, W // 2)
    dec_2 = conv2n_fwd(P["conv_2nV1_1"],
                       jnp.concatenate([dec_2, skip_2], axis=-1), skip_4)
    dec_2, _ = mksp_fwd(None, dec_2)
    dec_2, _ = mksp_fwd(None, dec_2)

    # Side outputs: conv -> resize -> sigmoid (sigmoid must come AFTER the resize
    # to match the reference, so it stays a separate lane-dense kernel).
    out32 = resize_bilinear(conv2d(dec_32, P["conv_out1"], padding=1), H, W)
    out16 = resize_bilinear(conv2d(dec_16, P["conv_out2"], padding=1), H, W)
    out8 = resize_bilinear(conv2d(dec_8, P["conv_out3"], padding=1), H, W)
    out4 = resize_bilinear(conv2d(dec_4, P["conv_out4"], padding=1), H, W)
    out2 = resize_bilinear(conv2d(dec_2, P["conv_out5"], padding=1), H, W)

    dec_1 = resize_bilinear(dec_2, H, W)
    mid = conv2d(dec_1, P["conv_final"]["conv1"], padding=1,
                 bn=P["conv_final"]["bn"], act="relu")
    # Final head: no resize between conv and sigmoid -> fuse sigmoid into the conv.
    out_final = conv2d(mid, P["conv_final"]["conv2"], padding=1, act="sigmoid")

    return (out_final,
            sigmoid_pallas(out2), sigmoid_pallas(out4), sigmoid_pallas(out8),
            sigmoid_pallas(out16), sigmoid_pallas(out32))


# --------------------------------------------------------------------------
if __name__ == "__main__":
    key = jax.random.PRNGKey(0)
    kx, kd = jax.random.split(key)
    H = W = 64                    # must be divisible by 32 for the /32 branch
    x = jax.random.normal(kx, (1, H, W, 3), jnp.float32)          # NHWC
    defocus = jax.random.uniform(kd, (1, H, W, 1), jnp.float32)   # NHWC, 1 ch

    params = init_basnet(ParamRNG(42), basic_channels=64)

    outs = basnet_forward(params, x, defocus)
    outs = jax.block_until_ready(outs)

    assert len(outs) == 6
    for o in outs:
        assert o.shape == (1, H, W, 1), o.shape
        assert bool(jnp.all(jnp.isfinite(o)))
        assert bool(jnp.all((o >= 0.0) & (o <= 1.0)))

    print("KERNEL_OK")
</pallas_src>

<mosaic_0001>
module attributes {stable_mosaic.version = 11 : i64} {
  func.func @kern(%arg0: i32, %arg1: memref<512x147xbf16, #tpu.memory_space<vmem>>, %arg2: memref<147x64xbf16, #tpu.memory_space<vmem>>, %arg3: memref<1x64xf32, #tpu.memory_space<vmem>>, %arg4: memref<512x64xf32, #tpu.memory_space<vmem>>) attributes {dimension_semantics = [#tpu.dimension_semantics<parallel>], iteration_bounds = array<i64: 4>, scalar_prefetch = 0 : i64, scratch_operands = 0 : i64, tpu.core_type = #tpu.core_type<tc>, window_params = [{transform_indices = @transform_0, window_bounds = array<i64: 512, 147>}, {pipeline_mode = #tpu.pipeline_mode<synchronous>, transform_indices = @transform_1, window_bounds = array<i64: 147, 64>}, {pipeline_mode = #tpu.pipeline_mode<synchronous>, transform_indices = @transform_2, window_bounds = array<i64: 1, 64>}, {transform_indices = @transform_3, window_bounds = array<i64: 512, 64>}]} {
    %c0 = arith.constant 0 : index
    %c0_0 = arith.constant 0 : index
    %0 = vector.load %arg1[%c0, %c0_0] : memref<512x147xbf16, #tpu.memory_space<vmem>>, vector<512x147xbf16>
    %c0_1 = arith.constant 0 : index
    %c0_2 = arith.constant 0 : index
    %1 = vector.load %arg2[%c0_1, %c0_2] : memref<147x64xbf16, #tpu.memory_space<vmem>>, vector<147x64xbf16>
    %cst = arith.constant dense<0.000000e+00> : vector<512x64xf32>
    %2 = tpu.matmul %0, %1, %cst {dimension_numbers = #tpu.dot_dimension_numbers<[1], [0], [0], [1], [0, 0, 1, 1], [], []>} : vector<512x147xbf16>, vector<147x64xbf16>, vector<512x64xf32> -> vector<512x64xf32>
    %c0_3 = arith.constant 0 : index
    %c0_4 = arith.constant 0 : index
    %3 = vector.load %arg3[%c0_3, %c0_4] : memref<1x64xf32, #tpu.memory_space<vmem>>, vector<1x64xf32>
    %4 = vector.broadcast %3 : vector<1x64xf32> to vector<512x64xf32>
    %5 = arith.addf %2, %4 : vector<512x64xf32>
    %cst_5 = arith.constant 0.000000e+00 : f32
    %6 = vector.broadcast %cst_5 : f32 to vector<512x64xf32>
    %7 = arith.maximumf %5, %6 : vector<512x64xf32>
    %c0_6 = arith.constant 0 : index
    %c0_7 = arith.constant 0 : index
    %8 = vector.load %arg4[%c0_6, %c0_7] : memref<512x64xf32, #tpu.memory_space<vmem>>, vector<512x64xf32>
    tpu.vector_store %arg4[%c0_6, %c0_7], %7 {strides = array<i32>} : memref<512x64xf32, #tpu.memory_space<vmem>>, vector<512x64xf32>,
    return
  }
  func.func @transform_0(%arg0: i32) -> (i32, i32) {
    %c0_i32 = arith.constant 0 : i32
    %c0_i32_0 = arith.constant 0 : i32
    return %arg0, %c0_i32 : i32, i32
  }
  func.func @transform_1(%arg0: i32) -> (i32, i32) {
    %c0_i32 = arith.constant 0 : i32
    %c0_i32_0 = arith.constant 0 : i32
    %c0_i32_1 = arith.constant 0 : i32
    return %c0_i32, %c0_i32_0 : i32, i32
  }
  func.func @transform_2(%arg0: i32) -> (i32, i32) {
    %c0_i32 = arith.constant 0 : i32
    %c0_i32_0 = arith.constant 0 : i32
    %c0_i32_1 = arith.constant 0 : i32
    return %c0_i32, %c0_i32_0 : i32, i32
  }
  func.func @transform_3(%arg0: i32) -> (i32, i32) {
    %c0_i32 = arith.constant 0 : i32
    %c0_i32_0 = arith.constant 0 : i32
    return %arg0, %c0_i32 : i32, i32
  }
}

</mosaic_0001>

<bundles_post_ra>
// kernel: tpu_custom_call.1
= control target key start
LH: loop header
LB: loop body
LE: loop exit
PB: predicated region body
PF: predicated region fallthrough
CT: control target
= control target key end

     0   :  { %s1477_s12 = smov 0   ;;  %s1828_s0 = inlined_call_operand.vmem [shape: bf16[2048,147], index: 0, kind: input, shape index: {}]   ;;  %s1829_s1 = inlined_call_operand.vmem [shape: bf16[147,64], index: 1, kind: input, shape index: {}]   ;;  %s1830_s2 = inlined_call_operand.vmem [shape: f32[1,64], index: 2, kind: input, shape index: {}]   ;;  %s1831_s3 = inlined_call_operand.vmem [shape: f32[2048,64], index: 3, kind: output, shape index: {}]  }
   0x1 LB: > { %s1191_s13 = sadd.s32 4294967295, %s1453_s12   ;;  %p1195_p0 = scmp.ge.s32.totalorder %s1453_s12, 1  ;;  %s1453_s12 = sphi %s1477_s12, %s13_s12  }
   0x2   : > { %p139_p1 = scmp.lt.s32.totalorder %s1453_s12, 5 }
   0x4   : > { %p140_p2 = pnand %p1195_p0, %p139_p1 }
   0x5   : > { %v1341_v0 = vld [vmem:[%s1829_s1] sm:$0xff] (!%p140_p2)   ;;  %v1455_v1 = vmov (!%p140_p2), 0   ;;  %v1342_v2 = vld [vmem:[%s1829_s1 + $0x8] sm:$0xff] (!%p140_p2)   ;;  %v1343_v3 = vld [vmem:[%s1829_s1 + $0x10] sm:$0xff] (!%p140_p2)   ;;  %s1196_s20 = sshll.u32 (!%p140_p2), %s1191_s13, 6  ;;  %vm613_vm0 = vcmask (!%p140_p2), 154624  }
   0x6   : > { %143 = sbr.rel (%p140_p2) target bundleno = 385 (0x181), region = 32  ;;  %717 = vmatprep.subr.bf16.mxu0 (!%p140_p2), %v1455_v1  ;;  %1311 = vmatprep.subr.bf16.mxu1 (!%p140_p2), %v1455_v1  ;;  %p165_p3 = scmp.lt.s32.totalorder (!%p140_p2), %s1196_s20, 255  ;;  %v1344_v4 = vld [vmem:[%s1829_s1 + $0x18] sm:$0xff] (!%p140_p2)   ;;  %v1345_v5 = vld [vmem:[%s1829_s1 + $0x20] sm:$0xff] (!%p140_p2)   ;;  %v1346_v8 = vld [vmem:[%s1829_s1 + $0x28] sm:$0xff] (!%p140_p2)   ;;  %vm710_vm1 = vcmask (!%p140_p2), 1040384  }
   0x7   : > { %718 = vmatpush1.bf16.msra.mxu0 (!%p140_p2), %v1341_v0  ;;  %1321 = vmatpush1.bf16.msra.mxu1 (!%p140_p2), %v1341_v0  ;;  %v1347_v9 = vld [vmem:[%s1829_s1 + $0x30] sm:$0xff] (!%p140_p2)   ;;  %v1348_v10 = vld [vmem:[%s1829_s1 + $0x38] sm:$0xff] (!%p140_p2)   ;;  %vm711_vm2 = vcmask (!%p140_p2), 1041408   ;;  %v1456_v11 = vmov (!%p140_p2), 65535   ;;  %v1349_v13 = vld [vmem:[%s1829_s1 + $0x40] sm:$0xff] (!%p140_p2)   ;;  %vm1070_vm3 = vcmask (!%p140_p2), 523264  }
   0x8   : > { %719 = vmatprep.subr.bf16.mxu0 (!%p140_p2), %v1455_v1  ;;  %1312 = vmatprep.subr.bf16.mxu1 (!%p140_p2), %v1455_v1  ;;  %v712_v12 = vsel (!%p140_p2), %vm710_vm1, 4294967295, %v1456_v11  ;;  %v1350_v14 = vld [vmem:[%s1829_s1 + $0x48] ss:$0 sps:$4 sm:$0x33] (!%p140_p2)  }
   0x9   : > { %v713_v15 = vsel (!%p140_p2), %vm711_vm2, %v712_v12, 0 }
   0xa   : > { %v715_v16 = vand.u32 (!%p140_p2), %v1350_v14, %v713_v15  ;;  %v1624_v15 = vld [vmem:[%s1830_s2] ss:$0 sm:$0xff] (!%p140_p2) }
   0xb   : > { %720 = vmatpush1.bf16.msra.mxu0 (!%p140_p2), %v1342_v2  ;;  %1322 = vmatpush1.bf16.msra.mxu1 (!%p140_p2), %v1342_v2 }
   0xc   : > { %721 = vmatprep.subr.bf16.mxu0 (!%p140_p2), %v1455_v1  ;;  %1313 = vmatprep.subr.bf16.mxu1 (!%p140_p2), %v1455_v1 }
   0xd   : > { %s1833_s20 = smov (!%p165_p3, %s1196_s20), 255 }
   0xe   : > { %s1310_s23 = sshll.u32 %s1833_s20, 3 }
   0xf   : > { %722 = vmatpush1.bf16.msra.mxu0 %v1343_v3  ;;  %1323 = vmatpush1.bf16.msra.mxu1 %v1343_v3  ;;  %s1505_s26 = scalar_lea.vmem %s1828_s0, %s1310_s23  ;;  %s1633_s17 = scalar_lea.vmem %s1831_s3, %s1310_s23 }
  0x10   : > { %723 = vmatprep.subr.bf16.mxu0 %v1455_v1  ;;  %1314 = vmatprep.subr.bf16.mxu1 %v1455_v1  ;;  %v1353_v6 = vld [vmem:[%s1505_s26 + $0x4] ss:$8 sps:$4 sm:$0xff]   ;;  %v1351_v17 = vld [vmem:[%s1505_s26] ss:$8 sps:$4 sm:$0xff]   ;;  %v1357_v19 = vld [vmem:[%s1505_s26 + $0x14] ss:$8 sps:$4 sm:$0xff]  }
  0x11   : > { %v1356_v7 = vld [vmem:[%s1505_s26 + $0x104] ss:$8 sps:$4 sm:$0xff]   ;;  %1276 = vmatprep.mubr.msk.bf16.mxu0 %vm613_vm0, %v1353_v6  ;;  %v1354_v18 = vld [vmem:[%s1505_s26 + $0x100] ss:$8 sps:$4 sm:$0xff]   ;;  %v1359_v20 = vld [vmem:[%s1505_s26 + $0x114] ss:$8 sps:$4 sm:$0xff]  }
  0x12   : > { %1292 = vmatprep.mubr.msk.bf16.mxu1 %vm613_vm0, %v1356_v7  ;;  %v1361_v21 = vld [vmem:[%s1505_s26 + $0x10] ss:$8 sps:$4 sm:$0xff]   ;;  %v1363_v23 = vld [vmem:[%s1505_s26 + $0x24] ss:$8 sps:$4 sm:$0xff]   ;;  %v1367_v25 = vld [vmem:[%s1505_s26 + $0x20] ss:$8 sps:$4 sm:$0xff]  }
  0x13   : > { %724 = vmatpush1.bf16.msra.mxu0 %v1344_v4  ;;  %1324 = vmatpush1.bf16.msra.mxu1 %v1344_v4  ;;  %v1362_v22 = vld [vmem:[%s1505_s26 + $0x110] ss:$8 sps:$4 sm:$0xff]   ;;  %v1365_v24 = vld [vmem:[%s1505_s26 + $0x124] ss:$8 sps:$4 sm:$0xff]   ;;  %v1368_v26 = vld [vmem:[%s1505_s26 + $0x120] ss:$8 sps:$4 sm:$0xff]  }
  0x14   : > { %725 = vmatprep.subr.bf16.mxu0 %v1455_v1  ;;  %1315 = vmatprep.subr.bf16.mxu1 %v1455_v1  ;;  %v1369_v27 = vld [vmem:[%s1505_s26 + $0x34] ss:$8 sps:$4 sm:$0xff]   ;;  %v1373_v29 = vld [vmem:[%s1505_s26 + $0x30] ss:$8 sps:$4 sm:$0xff]   ;;  %v1375_v31 = vld [vmem:[%s1505_s26 + $0x44] ss:$8 sps:$4 sm:$0xff]  }
  0x15   : > { %v1371_v28 = vld [vmem:[%s1505_s26 + $0x134] ss:$8 sps:$4 sm:$0xff]   ;;  %v1374_v30 = vld [vmem:[%s1505_s26 + $0x130] ss:$8 sps:$4 sm:$0xff]   ;;  %v1377_v32 = vld [vmem:[%s1505_s26 + $0x144] ss:$8 sps:$4 sm:$0xff]  }
  0x16   : > { %v1379_v33 = vld [vmem:[%s1505_s26 + $0x40] ss:$8 sps:$4 sm:$0xff]   ;;  %v1381_v35 = vld [vmem:[%s1505_s26 + $0x54] ss:$8 sps:$4 sm:$0xff]   ;;  %v1385_v37 = vld [vmem:[%s1505_s26 + $0x50] ss:$8 sps:$4 sm:$0xff]  }
  0x17   : > { %726 = vmatpush1.bf16.msra.mxu0 %v1345_v5  ;;  %1325 = vmatpush1.bf16.msra.mxu1 %v1345_v5  ;;  %v1380_v34 = vld [vmem:[%s1505_s26 + $0x140] ss:$8 sps:$4 sm:$0xff]   ;;  %v1383_v36 = vld [vmem:[%s1505_s26 + $0x154] ss:$8 sps:$4 sm:$0xff]   ;;  %v1386_v38 = vld [vmem:[%s1505_s26 + $0x150] ss:$8 sps:$4 sm:$0xff]  }
  0x18   : > { %727 = vmatprep.subr.bf16.mxu0 %v1455_v1  ;;  %1316 = vmatprep.subr.bf16.mxu1 %v1455_v1  ;;  %v1387_v39 = vld [vmem:[%s1505_s26 + $0x64] ss:$8 sps:$4 sm:$0xff]   ;;  %v1391_v41 = vld [vmem:[%s1505_s26 + $0x60] ss:$8 sps:$4 sm:$0xff]   ;;  %v1393_v43 = vld [vmem:[%s1505_s26 + $0x74] ss:$8 sps:$4 sm:$0xff]  }
  0x19   : > { %v1389_v40 = vld [vmem:[%s1505_s26 + $0x164] ss:$8 sps:$4 sm:$0xff]   ;;  %v1392_v42 = vld [vmem:[%s1505_s26 + $0x160] ss:$8 sps:$4 sm:$0xff]   ;;  %v1395_v44 = vld [vmem:[%s1505_s26 + $0x174] ss:$8 sps:$4 sm:$0xff]  }
  0x1a   : > { %v1397_v45 = vld [vmem:[%s1505_s26 + $0x70] ss:$8 sps:$4 sm:$0xff]   ;;  %v1399_v47 = vld [vmem:[%s1505_s26 + $0x84] ss:$8 sps:$4 sm:$0xff]   ;;  %v1403_v49 = vld [vmem:[%s1505_s26 + $0x80] ss:$8 sps:$4 sm:$0xff]  }
  0x1b   : > { %728 = vmatpush1.bf16.msra.mxu0 %v1346_v8  ;;  %1326 = vmatpush1.bf16.msra.mxu1 %v1346_v8  ;;  %v1398_v46 = vld [vmem:[%s1505_s26 + $0x170] ss:$8 sps:$4 sm:$0xff]   ;;  %v1401_v48 = vld [vmem:[%s1505_s26 + $0x184] ss:$8 sps:$4 sm:$0xff]   ;;  %v1404_v50 = vld [vmem:[%s1505_s26 + $0x180] ss:$8 sps:$4 sm:$0xff]  }
  0x1c   : > { %729 = vmatprep.subr.bf16.mxu0 %v1455_v1  ;;  %1317 = vmatprep.subr.bf16.mxu1 %v1455_v1  ;;  %v1405_v51 = vld [vmem:[%s1505_s26 + $0x94] ss:$8 sps:$4 sm:$0xff]   ;;  %v1409_v53 = vld [vmem:[%s1505_s26 + $0x90] ss:$8 sps:$4 sm:$0xff]   ;;  %v1411_v55 = vld [vmem:[%s1505_s26 + $0xa4] ss:$8 sps:$4 sm:$0xff]  }
  0x1d   : > { %v1407_v52 = vld [vmem:[%s1505_s26 + $0x194] ss:$8 sps:$4 sm:$0xff]   ;;  %v1410_v54 = vld [vmem:[%s1505_s26 + $0x190] ss:$8 sps:$4 sm:$0xff]   ;;  %v1413_v56 = vld [vmem:[%s1505_s26 + $0x1a4] ss:$8 sps:$4 sm:$0xff]  }
  0x1e   : > { %v1415_v57 = vld [vmem:[%s1505_s26 + $0xa0] ss:$8 sps:$4 sm:$0xff]   ;;  %v1417_v59 = vld [vmem:[%s1505_s26 + $0xb4] ss:$8 sps:$4 sm:$0xff]   ;;  %v1421_v61 = vld [vmem:[%s1505_s26 + $0xb0] ss:$8 sps:$4 sm:$0xff]  }
  0x1f   : > { %730 = vmatpush1.bf16.msra.mxu0 %v1347_v9  ;;  %1327 = vmatpush1.bf16.msra.mxu1 %v1347_v9  ;;  %v1416_v58 = vld [vmem:[%s1505_s26 + $0x1a0] ss:$8 sps:$4 sm:$0xff]   ;;  %v1419_v60 = vld [vmem:[%s1505_s26 + $0x1b4] ss:$8 sps:$4 sm:$0xff]   ;;  %v1422_v62 = vld [vmem:[%s1505_s26 + $0x1b0] ss:$8 sps:$4 sm:$0xff]  }
  0x20   : > { %731 = vmatprep.subr.bf16.mxu0 %v1455_v1  ;;  %1318 = vmatprep.subr.bf16.mxu1 %v1455_v1  ;;  %v1423_v63 = vld [vmem:[%s1505_s26 + $0xc4] ss:$8 sps:$4 sm:$0xff]   ;;  %v1428_v2 = vld [vmem:[%s1505_s26 + $0x1c0] ss:$8 sps:$4 sm:$0xff]   ;;  %v1429_v3 = vld [vmem:[%s1505_s26 + $0xd4] ss:$8 sps:$4 sm:$0xff]  }
  0x21   : > { %v1425_v0 = vld [vmem:[%s1505_s26 + $0x1c4] ss:$8 sps:$4 sm:$0xff]   ;;  %v1431_v4 = vld [vmem:[%s1505_s26 + $0x1d4] ss:$8 sps:$4 sm:$0xff]   ;;  %v1433_v5 = vld [vmem:[%s1505_s26 + $0xd0] ss:$8 sps:$4 sm:$0xff]  }
  0x22   : > { %v1434_v6 = vld [vmem:[%s1505_s26 + $0x1d0] ss:$8 sps:$4 sm:$0xff]   ;;  %v1435_v7 = vld [vmem:[%s1505_s26 + $0xe4] ss:$8 sps:$4 sm:$0xff]   ;;  %v1439_v9 = vld [vmem:[%s1505_s26 + $0xe0] ss:$8 sps:$4 sm:$0xff]  }
  0x23   : > { %732 = vmatpush1.bf16.msra.mxu0 %v1348_v10  ;;  %1328 = vmatpush1.bf16.msra.mxu1 %v1348_v10  ;;  %v1437_v8 = vld [vmem:[%s1505_s26 + $0x1e4] ss:$8 sps:$4 sm:$0xff]   ;;  %v1440_v10 = vld [vmem:[%s1505_s26 + $0x1e0] ss:$8 sps:$4 sm:$0xff]   ;;  %v1441_v11 = vld [vmem:[%s1505_s26 + $0xf4] ss:$8 sps:$4 sm:$0xff]  }
  0x24   : > { %733 = vmatprep.subr.bf16.mxu0 %v1455_v1  ;;  %1319 = vmatprep.subr.bf16.mxu1 %v1455_v1  ;;  %v1443_v12 = vld [vmem:[%s1505_s26 + $0x1f4] ss:$8 sps:$4 sm:$0xff]   ;;  %v1446_v14 = vld [vmem:[%s1505_s26 + $0x1f0] ss:$8 sps:$4 sm:$0xff]  }
  0x27   : > { %734 = vmatpush1.bf16.msra.mxu0 %v1349_v13  ;;  %1329 = vmatpush1.bf16.msra.mxu1 %v1349_v13  ;;  %v1445_v13 = vld [vmem:[%s1505_s26 + $0xf0] ss:$8 sps:$4 sm:$0xff]  }
  0x28   : > { %735 = vmatprep.subr.bf16.mxu0 %v1455_v1  ;;  %1320 = vmatprep.subr.bf16.mxu1 %v1455_v1  ;;  %v1427_v1 = vld [vmem:[%s1505_s26 + $0xc0] ss:$8 sps:$4 sm:$0xff]  }
  0x2b   : > { %736 = vmatpush1.bf16.msra.mxu0 %v715_v16  ;;  %1330 = vmatpush1.bf16.msra.mxu1 %v715_v16 }
  0x2e   : > { %750 = vmatmul.mubr.bf16.vlgmr.msra.gmra.mrb[0].mxu0 %v1351_v17  ;;  %878 = vmatmul.mubr.bf16.vlgmr.msra.gmra.mrb[0].mxu1 %v1354_v18 }
  0x2f   : > { %1277 = vmatprep.mubr.msk.bf16.mxu0 %vm613_vm0, %v1357_v19  ;;  %1293 = vmatprep.mubr.msk.bf16.mxu1 %vm613_vm0, %v1359_v20 }
  0x36   : > { %758 = vmatmul.mubr.bf16.gmra.mrb[4].mxu0 %v1361_v21  ;;  %886 = vmatmul.mubr.bf16.gmra.mrb[4].mxu1 %v1362_v22 }
  0x37   : > { %1278 = vmatprep.mubr.msk.bf16.mxu0 %vm613_vm0, %v1363_v23  ;;  %1294 = vmatprep.mubr.msk.bf16.mxu1 %vm613_vm0, %v1365_v24 }
  0x3e   : > { %766 = vmatmul.mubr.bf16.gmra.mrb[8].mxu0 %v1367_v25  ;;  %894 = vmatmul.mubr.bf16.gmra.mrb[8].mxu1 %v1368_v26 }
  0x3f   : > { %1279 = vmatprep.mubr.msk.bf16.mxu0 %vm613_vm0, %v1369_v27  ;;  %1295 = vmatprep.mubr.msk.bf16.mxu1 %vm613_vm0, %v1371_v28 }
  0x46   : > { %774 = vmatmul.mubr.bf16.gmra.mrb[12].mxu0 %v1373_v29  ;;  %902 = vmatmul.mubr.bf16.gmra.mrb[12].mxu1 %v1374_v30 }
  0x47   : > { %1280 = vmatprep.mubr.msk.bf16.mxu0 %vm613_vm0, %v1375_v31  ;;  %1296 = vmatprep.mubr.msk.bf16.mxu1 %vm613_vm0, %v1377_v32 }
  0x4e   : > { %782 = vmatmul.mubr.bf16.gmra.mrb[16].mxu0 %v1379_v33  ;;  %910 = vmatmul.mubr.bf16.gmra.mrb[16].mxu1 %v1380_v34 }
  0x4f   : > { %1281 = vmatprep.mubr.msk.bf16.mxu0 %vm613_vm0, %v1381_v35  ;;  %1297 = vmatprep.mubr.msk.bf16.mxu1 %vm613_vm0, %v1383_v36 }
  0x56   : > { %790 = vmatmul.mubr.bf16.gmra.mrb[20].mxu0 %v1385_v37  ;;  %918 = vmatmul.mubr.bf16.gmra.mrb[20].mxu1 %v1386_v38 }
  0x57   : > { %1282 = vmatprep.mubr.msk.bf16.mxu0 %vm613_vm0, %v1387_v39  ;;  %1298 = vmatprep.mubr.msk.bf16.mxu1 %vm613_vm0, %v1389_v40 }
  0x5e   : > { %798 = vmatmul.mubr.bf16.gmra.mrb[24].mxu0 %v1391_v41  ;;  %926 = vmatmul.mubr.bf16.gmra.mrb[24].mxu1 %v1392_v42 }
  0x5f   : > { %1283 = vmatprep.mubr.msk.bf16.mxu0 %vm613_vm0, %v1393_v43  ;;  %1299 = vmatprep.mubr.msk.bf16.mxu1 %vm613_vm0, %v1395_v44 }
  0x66   : > { %806 = vmatmul.mubr.bf16.gmra.mrb[28].mxu0 %v1397_v45  ;;  %934 = vmatmul.mubr.bf16.gmra.mrb[28].mxu1 %v1398_v46 }
  0x67   : > { %1284 = vmatprep.mubr.msk.bf16.mxu0 %vm613_vm0, %v1399_v47  ;;  %1300 = vmatprep.mubr.msk.bf16.mxu1 %vm613_vm0, %v1401_v48 }
  0x6e   : > { %814 = vmatmul.mubr.bf16.gmra.mrb[32].mxu0 %v1403_v49  ;;  %942 = vmatmul.mubr.bf16.gmra.mrb[32].mxu1 %v1404_v50 }
  0x6f   : > { %1285 = vmatprep.mubr.msk.bf16.mxu0 %vm613_vm0, %v1405_v51  ;;  %1301 = vmatprep.mubr.msk.bf16.mxu1 %vm613_vm0, %v1407_v52 }
  0x76   : > { %822 = vmatmul.mubr.bf16.gmra.mrb[36].mxu0 %v1409_v53  ;;  %950 = vmatmul.mubr.bf16.gmra.mrb[36].mxu1 %v1410_v54 }
  0x77   : > { %1286 = vmatprep.mubr.msk.bf16.mxu0 %vm613_vm0, %v1411_v55  ;;  %1302 = vmatprep.mubr.msk.bf16.mxu1 %vm613_vm0, %v1413_v56 }
  0x7e   : > { %830 = vmatmul.mubr.bf16.gmra.mrb[40].mxu0 %v1415_v57  ;;  %958 = vmatmul.mubr.bf16.gmra.mrb[40].mxu1 %v1416_v58 }
  0x7f   : > { %1287 = vmatprep.mubr.msk.bf16.mxu0 %vm613_vm0, %v1417_v59  ;;  %1303 = vmatprep.mubr.msk.bf16.mxu1 %vm613_vm0, %v1419_v60 }
  0x86   : > { %838 = vmatmul.mubr.bf16.gmra.mrb[44].mxu0 %v1421_v61  ;;  %966 = vmatmul.mubr.bf16.gmra.mrb[44].mxu1 %v1422_v62 }
  0x87   : > { %1288 = vmatprep.mubr.msk.bf16.mxu0 %vm613_vm0, %v1423_v63  ;;  %1304 = vmatprep.mubr.msk.bf16.mxu1 %vm613_vm0, %v1425_v0 }
  0x8e   : > { %846 = vmatmul.mubr.bf16.gmra.mrb[48].mxu0 %v1427_v1  ;;  %974 = vmatmul.mubr.bf16.gmra.mrb[48].mxu1 %v1428_v2 }
  0x8f   : > { %1289 = vmatprep.mubr.msk.bf16.mxu0 %vm613_vm0, %v1429_v3  ;;  %1305 = vmatprep.mubr.msk.bf16.mxu1 %vm613_vm0, %v1431_v4 }
  0x96   : > { %854 = vmatmul.mubr.bf16.gmra.mrb[52].mxu0 %v1433_v5  ;;  %982 = vmatmul.mubr.bf16.gmra.mrb[52].mxu1 %v1434_v6 }
  0x97   : > { %1290 = vmatprep.mubr.msk.bf16.mxu0 %vm613_vm0, %v1435_v7  ;;  %1306 = vmatprep.mubr.msk.bf16.mxu1 %vm613_vm0, %v1437_v8 }
  0x9e   : > { %862 = vmatmul.mubr.bf16.gmra.mrb[56].mxu0 %v1439_v9  ;;  %990 = vmatmul.mubr.bf16.gmra.mrb[56].mxu1 %v1440_v10 }
  0x9f   : > { %1291 = vmatprep.mubr.msk.bf16.mxu0 %vm613_vm0, %v1441_v11  ;;  %1307 = vmatprep.mubr.msk.bf16.mxu1 %vm613_vm0, %v1443_v12 }
  0xa6   : > { %870 = vmatmul.mubr.bf16.gmra.mrb[60].mxu0 %v1445_v13  ;;  %998 = vmatmul.mubr.bf16.gmra.mrb[60].mxu1 %v1446_v14 }
 0x101   : > { %v751_v16 = vpop.f32.mrb[0].mxu0  ;;  %v879_v17 = vpop.f32.mrb[0].mxu1 }
 0x102   : > { %v752_v18 = vadd.f32 %v1624_v15, %v751_v16  ;;  %v880_v19 = vadd.f32 %v1624_v15, %v879_v17  ;;  %v753_v20 = vpop.f32.mrb[1].mxu0  ;;  %v881_v21 = vpop.f32.mrb[1].mxu1 }
 0x103   : > { %v754_v22 = vpop.f32.mrb[2].mxu0  ;;  %v882_v23 = vpop.f32.mrb[2].mxu1 }
 0x104   : > { %v1006_v24 = vmax.f32 %v752_v18, 0.0  ;;  %v1038_v25 = vmax.f32 %v880_v19, 0.0  ;;  %v755_v26 = vadd.f32 %v1624_v15, %v754_v22  ;;  %v883_v27 = vadd.f32 %v1624_v15, %v882_v23  ;;  %v756_v28 = vpop.f32.mrb[3].mxu0  ;;  %v884_v29 = vpop.f32.mrb[3].mxu1 }
 0x106   : > { %1071 = vst.msk [vmem:[%s1633_s17] sm:$0xff] %vm1070_vm3, %v1006_v24  ;;  %1103 = vst.msk [vmem:[%s1633_s17 + $0x100] sm:$0xff] %vm1070_vm3, %v1038_v25  ;;  %v1007_v30 = vmax.f32 %v755_v26, 0.0  ;;  %v1039_v31 = vmax.f32 %v883_v27, 0.0 }
 0x108   : > { %1072 = vst.msk [vmem:[%s1633_s17 + $0x8] sm:$0xff] %vm1070_vm3, %v1007_v30  ;;  %1104 = vst.msk [vmem:[%s1633_s17 + $0x108] sm:$0xff] %vm1070_vm3, %v1039_v31 }
 0x109   : > { %v759_v32 = vpop.f32.mrb[4].mxu0  ;;  %v887_v33 = vpop.f32.mrb[4].mxu1 }
 0x10a   : > { %v760_v34 = vadd.f32 %v1624_v15, %v759_v32  ;;  %v888_v35 = vadd.f32 %v1624_v15, %v887_v33  ;;  %v761_v36 = vpop.f32.mrb[5].mxu0  ;;  %v889_v37 = vpop.f32.mrb[5].mxu1 }
 0x10b   : > { %v762_v38 = vpop.f32.mrb[6].mxu0  ;;  %v890_v39 = vpop.f32.mrb[6].mxu1 }
 0x10c   : > { %v1008_v40 = vmax.f32 %v760_v34, 0.0  ;;  %v1040_v41 = vmax.f32 %v888_v35, 0.0  ;;  %v763_v42 = vadd.f32 %v1624_v15, %v762_v38  ;;  %v891_v43 = vadd.f32 %v1624_v15, %v890_v39  ;;  %v764_v44 = vpop.f32.mrb[7].mxu0  ;;  %v892_v45 = vpop.f32.mrb[7].mxu1 }
 0x10e   : > { %1073 = vst.msk [vmem:[%s1633_s17 + $0x10] sm:$0xff] %vm1070_vm3, %v1008_v40  ;;  %1105 = vst.msk [vmem:[%s1633_s17 + $0x110] sm:$0xff] %vm1070_vm3, %v1040_v41  ;;  %v1009_v46 = vmax.f32 %v763_v42, 0.0  ;;  %v1041_v47 = vmax.f32 %v891_v43, 0.0 }
 0x110   : > { %1074 = vst.msk [vmem:[%s1633_s17 + $0x18] sm:$0xff] %vm1070_vm3, %v1009_v46  ;;  %1106 = vst.msk [vmem:[%s1633_s17 + $0x118] sm:$0xff] %vm1070_vm3, %v1041_v47 }
 0x111   : > { %v767_v48 = vpop.f32.mrb[8].mxu0  ;;  %v895_v49 = vpop.f32.mrb[8].mxu1 }
 0x112   : > { %v768_v50 = vadd.f32 %v1624_v15, %v767_v48  ;;  %v896_v51 = vadd.f32 %v1624_v15, %v895_v49  ;;  %v769_v52 = vpop.f32.mrb[9].mxu0  ;;  %v897_v53 = vpop.f32.mrb[9].mxu1 }
 0x113   : > { %v770_v54 = vpop.f32.mrb[10].mxu0  ;;  %v898_v55 = vpop.f32.mrb[10].mxu1 }
 0x114   : > { %v1010_v56 = vmax.f32 %v768_v50, 0.0  ;;  %v1042_v57 = vmax.f32 %v896_v51, 0.0  ;;  %v771_v58 = vadd.f32 %v1624_v15, %v770_v54  ;;  %v899_v59 = vadd.f32 %v1624_v15, %v898_v55  ;;  %v772_v60 = vpop.f32.mrb[11].mxu0  ;;  %v900_v61 = vpop.f32.mrb[11].mxu1 }
 0x116   : > { %1075 = vst.msk [vmem:[%s1633_s17 + $0x20] sm:$0xff] %vm1070_vm3, %v1010_v56  ;;  %1107 = vst.msk [vmem:[%s1633_s17 + $0x120] sm:$0xff] %vm1070_vm3, %v1042_v57  ;;  %v1011_v62 = vmax.f32 %v771_v58, 0.0  ;;  %v1043_v63 = vmax.f32 %v899_v59, 0.0 }
 0x118   : > { %1076 = vst.msk [vmem:[%s1633_s17 + $0x28] sm:$0xff] %vm1070_vm3, %v1011_v62  ;;  %1108 = vst.msk [vmem:[%s1633_s17 + $0x128] sm:$0xff] %vm1070_vm3, %v1043_v63 }
 0x119   : > { %v775_v0 = vpop.f32.mrb[12].mxu0  ;;  %v903_v1 = vpop.f32.mrb[12].mxu1 }
 0x11a   : > { %v776_v2 = vadd.f32 %v1624_v15, %v775_v0  ;;  %v904_v3 = vadd.f32 %v1624_v15, %v903_v1  ;;  %v777_v4 = vpop.f32.mrb[13].mxu0  ;;  %v905_v5 = vpop.f32.mrb[13].mxu1 }
 0x11b   : > { %v778_v6 = vpop.f32.mrb[14].mxu0  ;;  %v906_v7 = vpop.f32.mrb[14].mxu1 }
 0x11c   : > { %v1012_v8 = vmax.f32 %v776_v2, 0.0  ;;  %v1044_v9 = vmax.f32 %v904_v3, 0.0  ;;  %v779_v10 = vadd.f32 %v1624_v15, %v778_v6  ;;  %v907_v11 = vadd.f32 %v1624_v15, %v906_v7  ;;  %v780_v12 = vpop.f32.mrb[15].mxu0  ;;  %v908_v13 = vpop.f32.mrb[15].mxu1 }
 0x11e   : > { %1077 = vst.msk [vmem:[%s1633_s17 + $0x30] sm:$0xff] %vm1070_vm3, %v1012_v8  ;;  %1109 = vst.msk [vmem:[%s1633_s17 + $0x130] sm:$0xff] %vm1070_vm3, %v1044_v9  ;;  %v1013_v14 = vmax.f32 %v779_v10, 0.0  ;;  %v1045_v16 = vmax.f32 %v907_v11, 0.0 }
 0x120   : > { %1078 = vst.msk [vmem:[%s1633_s17 + $0x38] sm:$0xff] %vm1070_vm3, %v1013_v14  ;;  %1110 = vst.msk [vmem:[%s1633_s17 + $0x138] sm:$0xff] %vm1070_vm3, %v1045_v16 }
 0x121   : > { %v783_v17 = vpop.f32.mrb[16].mxu0  ;;  %v911_v18 = vpop.f32.mrb[16].mxu1 }
 0x122   : > { %v784_v19 = vadd.f32 %v1624_v15, %v783_v17  ;;  %v912_v20 = vadd.f32 %v1624_v15, %v911_v18  ;;  %v785_v21 = vpop.f32.mrb[17].mxu0  ;;  %v913_v22 = vpop.f32.mrb[17].mxu1 }
 0x123   : > { %v786_v23 = vpop.f32.mrb[18].mxu0  ;;  %v914_v24 = vpop.f32.mrb[18].mxu1 }
 0x124   : > { %v1014_v25 = vmax.f32 %v784_v19, 0.0  ;;  %v1046_v26 = vmax.f32 %v912_v20, 0.0  ;;  %v787_v27 = vadd.f32 %v1624_v15, %v786_v23  ;;  %v915_v28 = vadd.f32 %v1624_v15, %v914_v24  ;;  %v788_v29 = vpop.f32.mrb[19].mxu0  ;;  %v916_v30 = vpop.f32.mrb[19].mxu1 }
 0x126   : > { %1079 = vst.msk [vmem:[%s1633_s17 + $0x40] sm:$0xff] %vm1070_vm3, %v1014_v25  ;;  %1111 = vst.msk [vmem:[%s1633_s17 + $0x140] sm:$0xff] %vm1070_vm3, %v1046_v26  ;;  %v1015_v31 = vmax.f32 %v787_v27, 0.0  ;;  %v1047_v32 = vmax.f32 %v915_v28, 0.0 }
 0x128   : > { %1080 = vst.msk [vmem:[%s1633_s17 + $0x48] sm:$0xff] %vm1070_vm3, %v1015_v31  ;;  %1112 = vst.msk [vmem:[%s1633_s17 + $0x148] sm:$0xff] %vm1070_vm3, %v1047_v32 }
 0x129   : > { %v791_v33 = vpop.f32.mrb[20].mxu0  ;;  %v919_v34 = vpop.f32.mrb[20].mxu1 }
 0x12a   : > { %v792_v35 = vadd.f32 %v1624_v15, %v791_v33  ;;  %v920_v36 = vadd.f32 %v1624_v15, %v919_v34  ;;  %v793_v37 = vpop.f32.mrb[21].mxu0  ;;  %v921_v38 = vpop.f32.mrb[21].mxu1 }
 0x12b   : > { %v794_v39 = vpop.f32.mrb[22].mxu0  ;;  %v922_v40 = vpop.f32.mrb[22].mxu1 }
 0x12c   : > { %v1016_v41 = vmax.f32 %v792_v35, 0.0  ;;  %v1048_v42 = vmax.f32 %v920_v36, 0.0  ;;  %v795_v43 = vadd.f32 %v1624_v15, %v794_v39  ;;  %v923_v44 = vadd.f32 %v1624_v15, %v922_v40  ;;  %v796_v45 = vpop.f32.mrb[23].mxu0  ;;  %v924_v46 = vpop.f32.mrb[23].mxu1 }
 0x12e   : > { %1081 = vst.msk [vmem:[%s1633_s17 + $0x50] sm:$0xff] %vm1070_vm3, %v1016_v41  ;;  %1113 = vst.msk [vmem:[%s1633_s17 + $0x150] sm:$0xff] %vm1070_vm3, %v1048_v42  ;;  %v1017_v47 = vmax.f32 %v795_v43, 0.0  ;;  %v1049_v48 = vmax.f32 %v923_v44, 0.0 }
 0x130   : > { %1082 = vst.msk [vmem:[%s1633_s17 + $0x58] sm:$0xff] %vm1070_vm3, %v1017_v47  ;;  %1114 = vst.msk [vmem:[%s1633_s17 + $0x158] sm:$0xff] %vm1070_vm3, %v1049_v48 }
 0x131   : > { %v799_v49 = vpop.f32.mrb[24].mxu0  ;;  %v927_v50 = vpop.f32.mrb[24].mxu1 }
 0x132   : > { %v800_v51 = vadd.f32 %v1624_v15, %v799_v49  ;;  %v928_v52 = vadd.f32 %v1624_v15, %v927_v50  ;;  %v801_v53 = vpop.f32.mrb[25].mxu0  ;;  %v929_v54 = vpop.f32.mrb[25].mxu1 }
 0x133   : > { %v802_v55 = vpop.f32.mrb[26].mxu0  ;;  %v930_v56 = vpop.f32.mrb[26].mxu1 }
 0x134   : > { %v1018_v57 = vmax.f32 %v800_v51, 0.0  ;;  %v1050_v58 = vmax.f32 %v928_v52, 0.0  ;;  %v803_v59 = vadd.f32 %v1624_v15, %v802_v55  ;;  %v931_v60 = vadd.f32 %v1624_v15, %v930_v56  ;;  %v804_v61 = vpop.f32.mrb[27].mxu0  ;;  %v932_v62 = vpop.f32.mrb[27].mxu1 }
 0x136   : > { %1083 = vst.msk [vmem:[%s1633_s17 + $0x60] sm:$0xff] %vm1070_vm3, %v1018_v57  ;;  %1115 = vst.msk [vmem:[%s1633_s17 + $0x160] sm:$0xff] %vm1070_vm3, %v1050_v58  ;;  %v1019_v63 = vmax.f32 %v803_v59, 0.0  ;;  %v1051_v0 = vmax.f32 %v931_v60, 0.0 }
 0x138   : > { %1084 = vst.msk [vmem:[%s1633_s17 + $0x68] sm:$0xff] %vm1070_vm3, %v1019_v63  ;;  %1116 = vst.msk [vmem:[%s1633_s17 + $0x168] sm:$0xff] %vm1070_vm3, %v1051_v0 }
 0x139   : > { %v807_v1 = vpop.f32.mrb[28].mxu0  ;;  %v935_v2 = vpop.f32.mrb[28].mxu1 }
 0x13a   : > { %v808_v3 = vadd.f32 %v1624_v15, %v807_v1  ;;  %v936_v4 = vadd.f32 %v1624_v15, %v935_v2  ;;  %v809_v5 = vpop.f32.mrb[29].mxu0  ;;  %v937_v6 = vpop.f32.mrb[29].mxu1 }
 0x13b   : > { %v810_v7 = vpop.f32.mrb[30].mxu0  ;;  %v938_v8 = vpop.f32.mrb[30].mxu1 }
 0x13c   : > { %v1020_v9 = vmax.f32 %v808_v3, 0.0  ;;  %v1052_v10 = vmax.f32 %v936_v4, 0.0  ;;  %v811_v11 = vadd.f32 %v1624_v15, %v810_v7  ;;  %v939_v12 = vadd.f32 %v1624_v15, %v938_v8  ;;  %v812_v13 = vpop.f32.mrb[31].mxu0  ;;  %v940_v14 = vpop.f32.mrb[31].mxu1 }
 0x13e   : > { %1085 = vst.msk [vmem:[%s1633_s17 + $0x70] sm:$0xff] %vm1070_vm3, %v1020_v9  ;;  %1117 = vst.msk [vmem:[%s1633_s17 + $0x170] sm:$0xff] %vm1070_vm3, %v1052_v10  ;;  %v1021_v16 = vmax.f32 %v811_v11, 0.0  ;;  %v1053_v17 = vmax.f32 %v939_v12, 0.0 }
 0x140   : > { %1086 = vst.msk [vmem:[%s1633_s17 + $0x78] sm:$0xff] %vm1070_vm3, %v1021_v16  ;;  %1118 = vst.msk [vmem:[%s1633_s17 + $0x178] sm:$0xff] %vm1070_vm3, %v1053_v17 }
 0x141   : > { %v815_v18 = vpop.f32.mrb[32].mxu0  ;;  %v943_v19 = vpop.f32.mrb[32].mxu1 }
 0x142   : > { %v816_v20 = vadd.f32 %v1624_v15, %v815_v18  ;;  %v944_v21 = vadd.f32 %v1624_v15, %v943_v19  ;;  %v817_v22 = vpop.f32.mrb[33].mxu0  ;;  %v945_v23 = vpop.f32.mrb[33].mxu1 }
 0x143   : > { %v818_v24 = vpop.f32.mrb[34].mxu0  ;;  %v946_v25 = vpop.f32.mrb[34].mxu1 }
 0x144   : > { %v1022_v26 = vmax.f32 %v816_v20, 0.0  ;;  %v1054_v27 = vmax.f32 %v944_v21, 0.0  ;;  %v819_v28 = vadd.f32 %v1624_v15, %v818_v24  ;;  %v947_v29 = vadd.f32 %v1624_v15, %v946_v25  ;;  %v820_v30 = vpop.f32.mrb[35].mxu0  ;;  %v948_v31 = vpop.f32.mrb[35].mxu1 }
 0x146   : > { %1087 = vst.msk [vmem:[%s1633_s17 + $0x80] sm:$0xff] %vm1070_vm3, %v1022_v26  ;;  %1119 = vst.msk [vmem:[%s1633_s17 + $0x180] sm:$0xff] %vm1070_vm3, %v1054_v27  ;;  %v1023_v32 = vmax.f32 %v819_v28, 0.0  ;;  %v1055_v33 = vmax.f32 %v947_v29, 0.0 }
 0x148   : > { %1088 = vst.msk [vmem:[%s1633_s17 + $0x88] sm:$0xff] %vm1070_vm3, %v1023_v32  ;;  %1120 = vst.msk [vmem:[%s1633_s17 + $0x188] sm:$0xff] %vm1070_vm3, %v1055_v33 }
 0x149   : > { %v823_v34 = vpop.f32.mrb[36].mxu0  ;;  %v951_v35 = vpop.f32.mrb[36].mxu1 }
 0x14a   : > { %v824_v36 = vadd.f32 %v1624_v15, %v823_v34  ;;  %v952_v37 = vadd.f32 %v1624_v15, %v951_v35  ;;  %v825_v38 = vpop.f32.mrb[37].mxu0  ;;  %v953_v39 = vpop.f32.mrb[37].mxu1 }
 0x14b   : > { %v826_v40 = vpop.f32.mrb[38].mxu0  ;;  %v954_v41 = vpop.f32.mrb[38].mxu1 }
 0x14c   : > { %v1024_v42 = vmax.f32 %v824_v36, 0.0  ;;  %v1056_v43 = vmax.f32 %v952_v37, 0.0  ;;  %v827_v44 = vadd.f32 %v1624_v15, %v826_v40  ;;  %v955_v45 = vadd.f32 %v1624_v15, %v954_v41  ;;  %v828_v46 = vpop.f32.mrb[39].mxu0  ;;  %v956_v47 = vpop.f32.mrb[39].mxu1 }
 0x14e   : > { %1089 = vst.msk [vmem:[%s1633_s17 + $0x90] sm:$0xff] %vm1070_vm3, %v1024_v42  ;;  %1121 = vst.msk [vmem:[%s1633_s17 + $0x190] sm:$0xff] %vm1070_vm3, %v1056_v43  ;;  %v1025_v48 = vmax.f32 %v827_v44, 0.0  ;;  %v1057_v49 = vmax.f32 %v955_v45, 0.0 }
 0x150   : > { %1090 = vst.msk [vmem:[%s1633_s17 + $0x98] sm:$0xff] %vm1070_vm3, %v1025_v48  ;;  %1122 = vst.msk [vmem:[%s1633_s17 + $0x198] sm:$0xff] %vm1070_vm3, %v1057_v49 }
 0x151   : > { %v831_v50 = vpop.f32.mrb[40].mxu0  ;;  %v959_v51 = vpop.f32.mrb[40].mxu1 }
 0x152   : > { %v832_v52 = vadd.f32 %v1624_v15, %v831_v50  ;;  %v960_v53 = vadd.f32 %v1624_v15, %v959_v51  ;;  %v833_v54 = vpop.f32.mrb[41].mxu0  ;;  %v961_v55 = vpop.f32.mrb[41].mxu1 }
 0x153   : > { %v834_v56 = vpop.f32.mrb[42].mxu0  ;;  %v962_v57 = vpop.f32.mrb[42].mxu1 }
 0x154   : > { %v1026_v58 = vmax.f32 %v832_v52, 0.0  ;;  %v1058_v59 = vmax.f32 %v960_v53, 0.0  ;;  %v835_v60 = vadd.f32 %v1624_v15, %v834_v56  ;;  %v963_v61 = vadd.f32 %v1624_v15, %v962_v57  ;;  %v836_v62 = vpop.f32.mrb[43].mxu0  ;;  %v964_v63 = vpop.f32.mrb[43].mxu1 }
 0x156   : > { %1091 = vst.msk [vmem:[%s1633_s17 + $0xa0] sm:$0xff] %vm1070_vm3, %v1026_v58  ;;  %1123 = vst.msk [vmem:[%s1633_s17 + $0x1a0] sm:$0xff] %vm1070_vm3, %v1058_v59  ;;  %v1027_v0 = vmax.f32 %v835_v60, 0.0  ;;  %v1059_v1 = vmax.f32 %v963_v61, 0.0 }
 0x158   : > { %1092 = vst.msk [vmem:[%s1633_s17 + $0xa8] sm:$0xff] %vm1070_vm3, %v1027_v0  ;;  %1124 = vst.msk [vmem:[%s1633_s17 + $0x1a8] sm:$0xff] %vm1070_vm3, %v1059_v1 }
 0x159   : > { %v839_v2 = vpop.f32.mrb[44].mxu0  ;;  %v967_v3 = vpop.f32.mrb[44].mxu1 }
 0x15a   : > { %v840_v4 = vadd.f32 %v1624_v15, %v839_v2  ;;  %v968_v5 = vadd.f32 %v1624_v15, %v967_v3  ;;  %v841_v6 = vpop.f32.mrb[45].mxu0  ;;  %v969_v7 = vpop.f32.mrb[45].mxu1 }
 0x15b   : > { %v842_v8 = vpop.f32.mrb[46].mxu0  ;;  %v970_v9 = vpop.f32.mrb[46].mxu1 }
 0x15c   : > { %v1028_v10 = vmax.f32 %v840_v4, 0.0  ;;  %v1060_v11 = vmax.f32 %v968_v5, 0.0  ;;  %v843_v12 = vadd.f32 %v1624_v15, %v842_v8  ;;  %v971_v13 = vadd.f32 %v1624_v15, %v970_v9  ;;  %v844_v14 = vpop.f32.mrb[47].mxu0  ;;  %v972_v16 = vpop.f32.mrb[47].mxu1 }
 0x15e   : > { %1093 = vst.msk [vmem:[%s1633_s17 + $0xb0] sm:$0xff] %vm1070_vm3, %v1028_v10  ;;  %1125 = vst.msk [vmem:[%s1633_s17 + $0x1b0] sm:$0xff] %vm1070_vm3, %v1060_v11  ;;  %v1029_v17 = vmax.f32 %v843_v12, 0.0  ;;  %v1061_v18 = vmax.f32 %v971_v13, 0.0 }
 0x160   : > { %1094 = vst.msk [vmem:[%s1633_s17 + $0xb8] sm:$0xff] %vm1070_vm3, %v1029_v17  ;;  %1126 = vst.msk [vmem:[%s1633_s17 + $0x1b8] sm:$0xff] %vm1070_vm3, %v1061_v18 }
 0x161   : > { %v847_v19 = vpop.f32.mrb[48].mxu0  ;;  %v975_v20 = vpop.f32.mrb[48].mxu1 }
 0x162   : > { %v848_v21 = vadd.f32 %v1624_v15, %v847_v19  ;;  %v976_v22 = vadd.f32 %v1624_v15, %v975_v20  ;;  %v849_v23 = vpop.f32.mrb[49].mxu0  ;;  %v977_v24 = vpop.f32.mrb[49].mxu1 }
 0x163   : > { %v850_v25 = vpop.f32.mrb[50].mxu0  ;;  %v978_v26 = vpop.f32.mrb[50].mxu1 }
 0x164   : > { %v1030_v27 = vmax.f32 %v848_v21, 0.0  ;;  %v1062_v28 = vmax.f32 %v976_v22, 0.0  ;;  %v851_v29 = vadd.f32 %v1624_v15, %v850_v25  ;;  %v979_v30 = vadd.f32 %v1624_v15, %v978_v26  ;;  %v852_v31 = vpop.f32.mrb[51].mxu0  ;;  %v980_v32 = vpop.f32.mrb[51].mxu1 }
 0x166   : > { %1095 = vst.msk [vmem:[%s1633_s17 + $0xc0] sm:$0xff] %vm1070_vm3, %v1030_v27  ;;  %1127 = vst.msk [vmem:[%s1633_s17 + $0x1c0] sm:$0xff] %vm1070_vm3, %v1062_v28  ;;  %v1031_v33 = vmax.f32 %v851_v29, 0.0  ;;  %v1063_v34 = vmax.f32 %v979_v30, 0.0 }
 0x168   : > { %1096 = vst.msk [vmem:[%s1633_s17 + $0xc8] sm:$0xff] %vm1070_vm3, %v1031_v33  ;;  %1128 = vst.msk [vmem:[%s1633_s17 + $0x1c8] sm:$0xff] %vm1070_vm3, %v1063_v34 }
 0x169   : > { %v855_v35 = vpop.f32.mrb[52].mxu0  ;;  %v983_v36 = vpop.f32.mrb[52].mxu1 }
 0x16a   : > { %v856_v37 = vadd.f32 %v1624_v15, %v855_v35  ;;  %v984_v38 = vadd.f32 %v1624_v15, %v983_v36  ;;  %v857_v39 = vpop.f32.mrb[53].mxu0  ;;  %v985_v40 = vpop.f32.mrb[53].mxu1 }
 0x16b   : > { %v858_v41 = vpop.f32.mrb[54].mxu0  ;;  %v986_v42 = vpop.f32.mrb[54].mxu1 }
 0x16c   : > { %v1032_v43 = vmax.f32 %v856_v37, 0.0  ;;  %v1064_v44 = vmax.f32 %v984_v38, 0.0  ;;  %v859_v45 = vadd.f32 %v1624_v15, %v858_v41  ;;  %v987_v46 = vadd.f32 %v1624_v15, %v986_v42  ;;  %v860_v47 = vpop.f32.mrb[55].mxu0  ;;  %v988_v48 = vpop.f32.mrb[55].mxu1 }
 0x16e   : > { %1097 = vst.msk [vmem:[%s1633_s17 + $0xd0] sm:$0xff] %vm1070_vm3, %v1032_v43  ;;  %1129 = vst.msk [vmem:[%s1633_s17 + $0x1d0] sm:$0xff] %vm1070_vm3, %v1064_v44  ;;  %v1033_v49 = vmax.f32 %v859_v45, 0.0  ;;  %v1065_v50 = vmax.f32 %v987_v46, 0.0 }
 0x170   : > { %1098 = vst.msk [vmem:[%s1633_s17 + $0xd8] sm:$0xff] %vm1070_vm3, %v1033_v49  ;;  %1130 = vst.msk [vmem:[%s1633_s17 + $0x1d8] sm:$0xff] %vm1070_vm3, %v1065_v50 }
 0x171   : > { %v863_v51 = vpop.f32.mrb[56].mxu0  ;;  %v991_v52 = vpop.f32.mrb[56].mxu1 }
 0x172   : > { %v864_v53 = vadd.f32 %v1624_v15, %v863_v51  ;;  %v992_v54 = vadd.f32 %v1624_v15, %v991_v52  ;;  %v865_v55 = vpop.f32.mrb[57].mxu0  ;;  %v993_v56 = vpop.f32.mrb[57].mxu1 }
 0x173   : > { %v866_v57 = vpop.f32.mrb[58].mxu0  ;;  %v994_v58 = vpop.f32.mrb[58].mxu1 }
 0x174   : > { %v1034_v59 = vmax.f32 %v864_v53, 0.0  ;;  %v1066_v60 = vmax.f32 %v992_v54, 0.0  ;;  %v867_v61 = vadd.f32 %v1624_v15, %v866_v57  ;;  %v995_v62 = vadd.f32 %v1624_v15, %v994_v58  ;;  %v868_v63 = vpop.f32.mrb[59].mxu0  ;;  %v996_v0 = vpop.f32.mrb[59].mxu1 }
 0x176   : > { %1099 = vst.msk [vmem:[%s1633_s17 + $0xe0] sm:$0xff] %vm1070_vm3, %v1034_v59  ;;  %1131 = vst.msk [vmem:[%s1633_s17 + $0x1e0] sm:$0xff] %vm1070_vm3, %v1066_v60  ;;  %v1035_v1 = vmax.f32 %v867_v61, 0.0  ;;  %v1067_v2 = vmax.f32 %v995_v62, 0.0 }
 0x178   : > { %1100 = vst.msk [vmem:[%s1633_s17 + $0xe8] sm:$0xff] %vm1070_vm3, %v1035_v1  ;;  %1132 = vst.msk [vmem:[%s1633_s17 + $0x1e8] sm:$0xff] %vm1070_vm3, %v1067_v2 }
 0x179   : > { %v871_v3 = vpop.f32.mrb[60].mxu0  ;;  %v999_v4 = vpop.f32.mrb[60].mxu1 }
 0x17a   : > { %v872_v5 = vadd.f32 %v1624_v15, %v871_v3  ;;  %v1000_v6 = vadd.f32 %v1624_v15, %v999_v4  ;;  %v873_v7 = vpop.f32.mrb[61].mxu0  ;;  %v1001_v8 = vpop.f32.mrb[61].mxu1 }
 0x17b   : > { %v874_v9 = vpop.f32.mrb[62].mxu0  ;;  %v1002_v10 = vpop.f32.mrb[62].mxu1 }
 0x17c   : > { %v1036_v11 = vmax.f32 %v872_v5, 0.0  ;;  %v1068_v12 = vmax.f32 %v1000_v6, 0.0  ;;  %v875_v13 = vadd.f32 %v1624_v15, %v874_v9  ;;  %v1003_v14 = vadd.f32 %v1624_v15, %v1002_v10  ;;  %v876_v16 = vpop.f32.mrb[63].mxu0  ;;  %v1004_v17 = vpop.f32.mrb[63].mxu1 }
 0x17e   : > { %1101 = vst.msk [vmem:[%s1633_s17 + $0xf0] sm:$0xff] %vm1070_vm3, %v1036_v11  ;;  %1133 = vst.msk [vmem:[%s1633_s17 + $0x1f0] sm:$0xff] %vm1070_vm3, %v1068_v12  ;;  %v1037_v18 = vmax.f32 %v875_v13, 0.0  ;;  %v1069_v19 = vmax.f32 %v1003_v14, 0.0 }
 0x180   : > { %1102 = vst.msk [vmem:[%s1633_s17 + $0xf8] sm:$0xff] %vm1070_vm3, %v1037_v18  ;;  %1134 = vst.msk [vmem:[%s1633_s17 + $0x1f8] sm:$0xff] %vm1070_vm3, %v1069_v19 }
 0x181 PF: > { %s13_s12 = sadd.s32 1, %s1453_s12  }
 0x182   : > { %p10_p4 = scmp.ge.s32.totalorder %s13_s12, 6  }
 0x184   :  { %12 = sbr.rel (!%p10_p4) target bundleno = 1 (0x1), region = 62 }

</bundles_post_ra>
